<compile_context>
chip_gen: v6e
topology: v6e:2x2x1
jax: 0.10.0
libtpu: 0.0.40
codegen_flags: <defaults>
</compile_context>

<pallas_src>
import math

import jax
import jax.numpy as jnp
from jax.experimental import pallas as pl
from jax.experimental.pallas import tpu as pltpu


def build_pe_table(maxl: int, d: int, dtype=jnp.float32) -> jnp.ndarray:
    """Replicates the PyTorch PE.__init__ buffer (shape (1, maxl, d)).

    Built in f32 and cast ONCE here to the activation dtype (perf: avoids a
    per-forward full-table astype pass over HBM).  Handles odd d by slicing.
    """
    encoding = jnp.zeros((maxl, d), dtype=jnp.float32)
    position = jnp.arange(0, maxl, dtype=jnp.float32)[:, None]        # (maxl, 1)
    dim_pos = jnp.arange(0, d, 2, dtype=jnp.float32)                  # (ceil(d/2),)
    inv_freq = jnp.exp(-(dim_pos * math.log(10000.0) / d))            # (ceil(d/2),)
    angles = position * inv_freq                                      # (maxl, ceil(d/2))
    encoding = encoding.at[:, 0::2].set(jnp.sin(angles))
    encoding = encoding.at[:, 1::2].set(jnp.cos(angles)[:, : d // 2])
    return encoding[None, :, :].astype(dtype)                         # (1, maxl, d)


def _pe_add_kernel(x_ref, pe_ref, o_ref):
    # Pure elementwise (broadcast) add; vld/vst are the only binding slots.
    o_ref[...] = x_ref[...] + pe_ref[...]


def _round_up(a: int, m: int) -> int:
    return ((a + m - 1) // m) * m


def _sublane_multiple(dtype) -> int:
    # Packed-sublane row multiple: 8 rows for 32-bit, 16 for 16-bit, 32 for 8-bit.
    isz = jnp.dtype(dtype).itemsize
    return {4: 8, 2: 16, 1: 32}.get(isz, 8)


def _vmem_budget():
    """Per-buffer tile budget and vmem limit, per TPU generation.

    3 arrays (x-in, pe, out) x 2 pipeline buffers = 6 live buffers, so:
      v5e / v6e (128 MiB VMEM): ~8 MiB/buffer, 64 MiB scoped limit.
      v7x       ( 64 MiB VMEM): ~5 MiB/buffer, 48 MiB scoped limit.
    """
    try:
        vmem = pltpu.get_tpu_info().vmem_capacity_bytes
    except Exception:
        vmem = 64 * 1024 * 1024  # be conservative (assume v7x-sized VMEM)
    if vmem >= 128 * 1024 * 1024:
        return 8 * 1024 * 1024, 64 * 1024 * 1024
    return 5 * 1024 * 1024, 48 * 1024 * 1024


def _choose_row_tile(L: int, d: int, itemsize: int, target_bytes: int, sub: int) -> int:
    """Largest sublane-aligned row tile that keeps one buffer under target_bytes."""
    budget_rows = max(sub, (target_bytes // max(1, d * itemsize)) // sub * sub)
    return max(sub, min(budget_rows, _round_up(L, sub)))


def _choose_col_tile(B: int, F: int, itemsize: int, target_bytes: int) -> int:
    """Lane-dense (multiple-of-128) column tile for the flattened fallback."""
    if F <= 128:
        return F                                  # full extent: always legal
    budget_cols = max(128, (target_bytes // max(1, B * itemsize)) // 128 * 128)
    cap = (F // 128) * 128 if F % 128 else F
    return max(128, min(budget_cols, cap))


# Below this many bytes of activation, a plain XLA add beats the pallas_call
# launch + pipeline prologue on every generation.
_TINY_BYPASS_BYTES = 256 * 1024


def pe_forward(x: jnp.ndarray, pe_table: jnp.ndarray, *, force_kernel: bool = False) -> jnp.ndarray:
    """x: (B, L, d); pe_table: (1, maxl, d).  Returns x + pe_table[:, :L]."""
    B, L, d = x.shape
    _, maxl, d_pe = pe_table.shape
    assert d_pe == d, "PE table model dim mismatch"
    assert L <= maxl, "sequence length exceeds PE table length"

    # Prefer pre-casting at init (build_pe_table(..., dtype=x.dtype)); this is a
    # no-op guard so semantics hold if the caller passes a mismatched table.
    pe = pe_table if pe_table.dtype == x.dtype else pe_table.astype(x.dtype)

    isz = jnp.dtype(x.dtype).itemsize
    if (not force_kernel) and (B * L * d * isz) < _TINY_BYPASS_BYTES:
        # Tiny-input bypass: fixed kernel launch overhead dominates here.
        return x + pe[:, :L]

    target_bytes, vmem_limit = _vmem_budget()

    if d % 128 == 0:
        # Main path: (TL, d) tiles, batch innermost so the PE block stays resident
        # in VMEM across the B inner steps (PE HBM traffic ~ once per L-tile).
        sub = _sublane_multiple(x.dtype)
        TL = _choose_row_tile(L, d, isz, target_bytes, sub)
        num_l = pl.cdiv(L, TL)
        return pl.pallas_call(
            _pe_add_kernel,
            out_shape=jax.ShapeDtypeStruct((B, L, d), x.dtype),
            grid_spec=pltpu.PrefetchScalarGridSpec(
                num_scalar_prefetch=0,
                grid=(num_l, B),                                       # B varies fastest
                in_specs=[
                    pl.BlockSpec((None, TL, d), lambda l, b: (b, l, 0)),   # x tile (squeezed batch)
                    pl.BlockSpec((None, TL, d), lambda l, b: (0, l, 0)),   # PE tile, constant over b
                ],
                out_specs=pl.BlockSpec((None, TL, d), lambda l, b: (b, l, 0)),
            ),
            compiler_params=pltpu.CompilerParams(
                # Split the megacore (v7x) on the sequence-tile axis, never on
                # the (possibly tiny / odd) batch axis.
                dimension_semantics=("parallel", "arbitrary"),
                vmem_limit_bytes=vmem_limit,
            ),
        )(x, pe)

    # Lane-dense fallback for d not a multiple of 128: flatten (L, d) -> F so
    # stores are unmasked vst instead of lane-sparse vst.msk.
    # TODO(synk): for B < 8 at scale, reshape to (B*F/128, 128) with a modulo PE
    # index_map for fully (8,128)-dense tiles; not the binding slot today.
    F = L * d
    x2 = x.reshape(B, F)
    pe2 = pe[:, :L, :].reshape(1, F)
    TC = _choose_col_tile(B, F, isz, target_bytes)
    num_f = pl.cdiv(F, TC)
    out2 = pl.pallas_call(
        _pe_add_kernel,
        out_shape=jax.ShapeDtypeStruct((B, F), x.dtype),
        grid_spec=pltpu.PrefetchScalarGridSpec(
            num_scalar_prefetch=0,
            grid=(num_f,),
            in_specs=[
                pl.BlockSpec((B, TC), lambda f: (0, f)),               # x columns (full batch rows)
                pl.BlockSpec((1, TC), lambda f: (0, f)),               # PE columns (broadcast over B)
            ],
            out_specs=pl.BlockSpec((B, TC), lambda f: (0, f)),
        ),
        compiler_params=pltpu.CompilerParams(
            dimension_semantics=("parallel",),
            vmem_limit_bytes=vmem_limit,
        ),
    )(x2, pe2)
    return out2.reshape(B, L, d)


if __name__ == "__main__":
    key = jax.random.PRNGKey(0)
    k1, k2, k3 = jax.random.split(key, 3)

    # Case 1: module's toy config (d not a multiple of 128 -> flattened path).
    # force_kernel=True so the Pallas path is exercised despite the tiny size.
    B, L, d, maxl = 2, 8, 32, 16
    x1 = jax.random.normal(k1, (B, L, d), dtype=jnp.float32)
    pe1 = build_pe_table(maxl, d, dtype=x1.dtype)
    out1 = jax.block_until_ready(pe_forward(x1, pe1, force_kernel=True))
    ref1 = x1 + pe1[:, :L]
    assert out1.shape == (B, L, d)
    assert jnp.allclose(out1, ref1, atol=1e-6), "mismatch vs reference (flattened path)"

    # Case 2: d multiple of 128 -> main (TL, d)-tiled path, ragged L handled by masking.
    B2, L2, d2, maxl2 = 2, 12, 128, 16
    x2 = jax.random.normal(k2, (B2, L2, d2), dtype=jnp.float32)
    pe2 = build_pe_table(maxl2, d2, dtype=x2.dtype)
    out2 = jax.block_until_ready(pe_forward(x2, pe2, force_kernel=True))
    ref2 = x2 + pe2[:, :L2]
    assert out2.shape == (B2, L2, d2)
    assert jnp.allclose(out2, ref2, atol=1e-6), "mismatch vs reference (tiled path)"

    # Case 3: odd d (builder slice) + F < 128 full-extent block.
    B3, L3, d3, maxl3 = 2, 8, 7, 16
    x3 = jax.random.normal(k3, (B3, L3, d3), dtype=jnp.float32)
    pe3 = build_pe_table(maxl3, d3, dtype=x3.dtype)
    out3 = jax.block_until_ready(pe_forward(x3, pe3, force_kernel=True))
    ref3 = x3 + pe3[:, :L3]
    assert jnp.allclose(out3, ref3, atol=1e-6), "mismatch vs reference (odd d)"

    # Case 4: default path (tiny-input bypass, plain XLA add).
    out4 = jax.block_until_ready(pe_forward(x1, pe1))
    assert jnp.allclose(out4, ref1, atol=1e-6), "mismatch vs reference (bypass path)"

    print("KERNEL_OK")
</pallas_src>

<mosaic_0001>
module attributes {stable_mosaic.version = 11 : i64} {
  func.func @_pe_add_kernel(%arg0: i32, %arg1: memref<2x256xf32, #tpu.memory_space<vmem>>, %arg2: memref<1x256xf32, #tpu.memory_space<vmem>>, %arg3: memref<2x256xf32, #tpu.memory_space<vmem>>) attributes {dimension_semantics = [#tpu.dimension_semantics<parallel>], iteration_bounds = array<i64: 1>, scalar_prefetch = 0 : i64, scratch_operands = 0 : i64, tpu.core_type = #tpu.core_type<tc>, window_params = [{transform_indices = @transform_0, window_bounds = array<i64: 2, 256>}, {transform_indices = @transform_1, window_bounds = array<i64: 1, 256>}, {transform_indices = @transform_2, window_bounds = array<i64: 2, 256>}]} {
    %c0 = arith.constant 0 : index
    %c0_0 = arith.constant 0 : index
    %0 = vector.load %arg1[%c0, %c0_0] : memref<2x256xf32, #tpu.memory_space<vmem>>, vector<2x256xf32>
    %c0_1 = arith.constant 0 : index
    %c0_2 = arith.constant 0 : index
    %1 = vector.load %arg2[%c0_1, %c0_2] : memref<1x256xf32, #tpu.memory_space<vmem>>, vector<1x256xf32>
    %2 = vector.broadcast %1 : vector<1x256xf32> to vector<2x256xf32>
    %3 = arith.addf %0, %2 : vector<2x256xf32>
    %c0_3 = arith.constant 0 : index
    %c0_4 = arith.constant 0 : index
    %4 = vector.load %arg3[%c0_3, %c0_4] : memref<2x256xf32, #tpu.memory_space<vmem>>, vector<2x256xf32>
    tpu.vector_store %arg3[%c0_3, %c0_4], %3 {strides = array<i32>} : memref<2x256xf32, #tpu.memory_space<vmem>>, vector<2x256xf32>,
    return
  }
  func.func @transform_0(%arg0: i32) -> (i32, i32) {
    %c0_i32 = arith.constant 0 : i32
    %c0_i32_0 = arith.constant 0 : i32
    return %c0_i32, %arg0 : i32, i32
  }
  func.func @transform_1(%arg0: i32) -> (i32, i32) {
    %c0_i32 = arith.constant 0 : i32
    %c0_i32_0 = arith.constant 0 : i32
    return %c0_i32, %arg0 : i32, i32
  }
  func.func @transform_2(%arg0: i32) -> (i32, i32) {
    %c0_i32 = arith.constant 0 : i32
    %c0_i32_0 = arith.constant 0 : i32
    return %c0_i32, %arg0 : i32, i32
  }
}

</mosaic_0001>

<bundles_post_ra>
// kernel: tpu_custom_call.1
= control target key start
LH: loop header
LB: loop body
LE: loop exit
PB: predicated region body
PF: predicated region fallthrough
CT: control target
= control target key end

     0   :  { %7 = vsyncpa [#allocation3], 0  ;;  %s172_s0 = inlined_call_operand.hbm [shape: f32[2,256], index: 0, kind: input, shape index: {}]   ;;  %s173_s1 = inlined_call_operand.hbm [shape: f32[1,256], index: 1, kind: input, shape index: {}]   ;;  %s174_s2 = inlined_call_operand.hbm [shape: f32[2,256], index: 2, kind: output, shape index: {}]  }
   0x1   :  { %8 = vsyncpa [#allocation6], 0 }
   0x2   :  { %9 = vsyncpa [#allocation4], 0  ;;  %s144_s9 = smov [#allocation2]   ;;  %s145_s11 = smov [#allocation5]  }
   0x3   :  { %s16_s10 = sshll.u32 %s144_s9, 4  ;;  %s26_s12 = sshll.u32 %s145_s11, 4  ;;  %s17_s10 = int_to_ptr.vmem [resolvable:$true] %s16_s10  ;;  %s27_s12 = int_to_ptr.vmem [resolvable:$true] %s26_s12 }
   0x4   :  { %s86_s13 = scalar_lea.vmem %s17_s10, 64  ;;  %p91_p1 = scmp.lt.s32.totalorder %s17_s10, %s17_s10 }
   0x5   :  { %p87_p0 = scmp.ne.s32.totalorder %s17_s10, %s86_s13  ;;  %p92_p2 = scmp.lt.s32.totalorder %s86_s13, %s86_s13 }
   0x7   :  { %p93_p3 = por %p92_p2, %p91_p1 }
   0x9   :  { %p94_p4 = pnand %p93_p3, %p87_p0 }
   0xb   :  { %97 = shalt.err (!%p94_p4)
}
   0xc   :  { %19 = dma.hbm_to_vmem [thread:$0]  %s172_s0, 64, %s17_s10, [#allocation3]  }
   0xd   :  { %s106_s16 = scalar_lea.vmem %s27_s12, 32  ;;  %p111_p6 = scmp.lt.s32.totalorder %s27_s12, %s27_s12 }
   0xe   :  { %p107_p5 = scmp.ne.s32.totalorder %s27_s12, %s106_s16  ;;  %p112_p7 = scmp.lt.s32.totalorder %s106_s16, %s106_s16 }
  0x10   :  { %p113_p8 = por %p112_p7, %p111_p6 }
  0x12   :  { %p114_p9 = pnand %p113_p8, %p107_p5 }
  0x14   :  { %117 = shalt.err (!%p114_p9)
}
  0x15   :  { %29 = dma.hbm_to_vmem [thread:$0]  %s173_s1, 32, %s27_s12, [#allocation6]  }
  0x16   :  { %138 = dma.done.wait [#allocation3], 64  }
  0x17   :  { %139 = vsyncadd [#allocation3], 4294967232 }
  0x18   :  { %140 = dma.done.wait [#allocation6], 32  }
  0x19   :  { %141 = vsyncadd [#allocation6], 4294967264  ;;  %v39_v0 = vlaneseq  ;;  %v146_v1 = vmov 1983009808   ;;  %v37_v7 = vld [vmem:[#allocation5] sm:$0x3] }
  0x1a   :  { %v49_v2 = vunpack.c.l.s4 %v146_v1  ;;  %v36_v12 = vld [vmem:[#allocation2] sm:$0xf]  ;;  %s147_s0 = smov [#allocation7]  }
  0x1b   :  { %v40_v3 = vshrl.u32 %v39_v0, 7  ;;  %s64_s19 = sshll.u32 %s147_s0, 4  ;;  %s65_s19 = int_to_ptr.vmem [resolvable:$true] %s64_s19 }
  0x1c   :  { %v50_v6 = vunpack.c.0.s8 %v49_v2  ;;  %s118_s1 = scalar_lea.vmem %s65_s19, 64  ;;  %p123_p11 = scmp.lt.s32.totalorder %s65_s19, %s65_s19 }
  0x1d   :  { %v41_v4 = vsub.s32 0, %v40_v3  ;;  %v45_v5 = vsub.s32 1, %v40_v3  ;;  %p119_p10 = scmp.ne.s32.totalorder %s65_s19, %s118_s1  ;;  %p124_p12 = scmp.lt.s32.totalorder %s118_s1, %s118_s1 }
  0x1e   :  { %v53_v10 = vsub.s32 %v50_v6, %v40_v3 }
  0x1f   :  { %v42_v8 = vrot.slane %v37_v7, %v41_v4  ;;  %v46_v9 = vrot.slane %v37_v7, %v45_v5  ;;  %p125_p13 = por %p124_p12, %p123_p11 }
  0x21   :  { %v47_v11 = vcombine.low %v42_v8, %v46_v9  ;;  %p126_p0 = pnand %p125_p13, %p119_p10 }
  0x23   :  { %v54_v13 = vrot.slane %v47_v11, %v53_v10 }
  0x25   :  { %v56_v14 = vadd.f32 %v54_v13, %v36_v12 }
  0x27   :  { %57 = vst [vmem:[#allocation7] sm:$0xf] %v56_v14 }
  0x28   :  { %129 = shalt.err (!%p126_p0)
}
  0x29   :  { %67 = dma.vmem_to_hbm [thread:$0]  %s65_s19, 64, %s174_s2, [#allocation4]  }
  0x2a   :  { %142 = dma.done.wait [#allocation4], 64  }
  0x2b   :  { %143 = vsyncadd [#allocation4], 4294967232 }
  0x2c   :  { %71 = vsyncpa [#allocation3], 1 }
  0x2d   :  { %72 = vsyncpa [#allocation6], 1 }
  0x2e   :  { %73 = vsyncpa [#allocation4], 1 }

</bundles_post_ra>
